<compile_context>
chip_gen: v7x
topology: tpu7x:2x2x1
jax: 0.10.0
libtpu: 0.0.40
codegen_flags: <defaults>
</compile_context>

<pallas_src>
import functools

import jax
import jax.numpy as jnp
from jax import lax
from jax.experimental import pallas as pl
from jax.experimental.pallas import tpu as pltpu

_LANES = 128
_SUBLANES = 8


def _dice_sums_kernel(*refs, num_classes, apply_softmax, has_mask,
                      num_rows, rows_per_tile, rows_per_chunk):
    """Per-batch accumulation of [intersect, y_sum, z_sum] for classes 1..C-1.

    Inputs are packed as (rows, 128) planes (sublane packing); class is a
    leading, non-layout axis.  Scratch: three (C-1, rows_per_chunk, 128) f32
    accumulators that persist over the row-tile grid axis and are reduced to a
    (C-1, 3) output once per batch element at the last tile.
    """
    if has_mask:
        score_ref, label_ref, mask_ref, out_ref, inter_acc, y_acc, z_acc = refs
    else:
        score_ref, label_ref, out_ref, inter_acc, y_acc, z_acc = refs
        mask_ref = None

    j = pl.program_id(1)
    nj = pl.num_programs(1)

    @pl.when(j == 0)
    def _init():
        inter_acc[...] = jnp.zeros_like(inter_acc)
        y_acc[...] = jnp.zeros_like(y_acc)
        z_acc[...] = jnp.zeros_like(z_acc)

    n_chunks = rows_per_tile // rows_per_chunk

    def accumulate(mask_rows):
        # Statically-unrolled chunk loop with vreg-aligned static offsets;
        # bounds live vregs to one (C, rows_per_chunk, 128) working set and
        # folds each chunk straight into the persistent VMEM accumulators.
        for c in range(n_chunks):
            r0 = c * rows_per_chunk
            rows = slice(r0, r0 + rows_per_chunk)

            s = score_ref[:, rows, :].astype(jnp.float32)      # (C, rc, 128)
            lab = label_ref[rows, :].astype(jnp.float32)       # (rc, 128)

            if apply_softmax:
                # softmax over the (leading) class axis: exp on the EUP plus an
                # approx reciprocal refined by two Newton steps (no vdiv).
                mx = jnp.max(s, axis=0, keepdims=True)
                e = jnp.exp(s - mx)
                denom = jnp.sum(e, axis=0, keepdims=True)
                r = pl.reciprocal(denom, approx=True)
                r = r * (2.0 - denom * r)
                r = r * (2.0 - denom * r)
                s = e * r

            sel_m = None                                        # bool (rc,128)
            if has_mask:
                mval = mask_ref[rows, :].astype(jnp.float32)
                sel_m = mval == 1.0                             # torch: mask == 1
            if mask_rows:
                row_id = (j * rows_per_tile + r0 +
                          lax.broadcasted_iota(jnp.int32,
                                               (rows_per_chunk, _LANES), 0))
                valid = row_id < num_rows
                sel_m = valid if sel_m is None else jnp.logical_and(sel_m, valid)

            # Class 0 (background) never contributes to the loss -> skipped.
            for i in range(1, num_classes):
                s_i = s[i]                                      # (rc, 128)
                onehot = lab == float(i)
                sel_t = (onehot if sel_m is None
                         else jnp.logical_and(onehot, sel_m))
                p_int = jnp.where(sel_t, s_i, 0.0)              # score * target
                p_y = jnp.where(sel_t, 1.0, 0.0)                # target^2
                sq = s_i * s_i                                  # score^2
                p_z = sq if sel_m is None else jnp.where(sel_m, sq, 0.0)
                idx = i - 1
                inter_acc[idx] += p_int
                y_acc[idx] += p_y
                z_acc[idx] += p_z

    ragged = (num_rows % rows_per_tile) != 0
    if ragged:
        # Row-validity masking only on the last tile; interior tiles run the
        # lean unmasked body (saves ~2-3 selects/element on VALU-bound chips).
        @pl.when(j < nj - 1)
        def _interior():
            accumulate(mask_rows=False)

        @pl.when(j == nj - 1)
        def _tail():
            accumulate(mask_rows=True)
    else:
        accumulate(mask_rows=False)

    @pl.when(j == nj - 1)
    def _finalize():
        def reduce_acc(acc):
            v = jnp.sum(acc[...], axis=2, keepdims=True)        # (C-1, rc, 1)
            return jnp.sum(v, axis=1)                           # (C-1, 1)

        out_ref[...] = jnp.concatenate(
            [reduce_acc(inter_acc), reduce_acc(y_acc), reduce_acc(z_acc)],
            axis=1)


def dice_loss_dat(inputs, target, weight=None, softmax=False, mask=None):
    """JAX/Pallas equivalent of DiceLoss_DAT.forward.

    inputs: (B, C, H, W) float logits/probabilities (any float dtype).
    target: (B, 1, H, W) or (B, H, W) label map (float- or int-valued).
    weight: optional per-class weights (length C; class 0 unused).
    mask:   optional (B, H, W) mask; pixels participate where mask == 1.
    """
    B, C, H, W = inputs.shape
    HW = H * W
    if C < 2:
        return jnp.zeros((), jnp.float32)  # torch loop over classes 1..C-1 is empty

    if target.ndim == 4:
        target = target[:, 0]

    # ---- layout plumbing: free reshapes only, no transpose / upcast --------
    score = inputs.reshape(B, C, HW)
    labels = target.reshape(B, HW)

    has_mask = mask is not None
    mask_flat = None
    if has_mask:
        mask_flat = mask.reshape(B, HW)
        if mask_flat.dtype == jnp.bool_:
            mask_flat = mask_flat.astype(jnp.uint8)   # avoid i1 operands; 1 B/px

    pad = (-HW) % _LANES
    if pad:
        # Rare edge case (H*W not a multiple of 128): pad once and zero the
        # padded pixels via the mask (softmax of padded zeros must not count).
        if mask_flat is None:
            mask_flat = jnp.ones((B, HW), jnp.uint8)
            has_mask = True
        score = jnp.pad(score, ((0, 0), (0, 0), (0, pad)))
        labels = jnp.pad(labels, ((0, 0), (0, pad)))
        mask_flat = jnp.pad(mask_flat, ((0, 0), (0, pad)))

    HWp = HW + pad
    R = HWp // _LANES                       # rows of 128 lanes
    score = score.reshape(B, C, R, _LANES)
    labels = labels.reshape(B, R, _LANES)
    mask_p = mask_flat.reshape(B, R, _LANES) if has_mask else None

    # ---- tile sizing (VMEM-aware, dtype/C-aware) ---------------------------
    # rows per inner chunk: keep the per-chunk score working set ~<=16 vregs.
    rpc = max(_SUBLANES, min(64, ((128 // C) // _SUBLANES) * _SUBLANES))

    score_bytes = score.dtype.itemsize
    label_bytes = labels.dtype.itemsize
    mask_bytes = mask_p.dtype.itemsize if has_mask else 0
    bytes_per_row = _LANES * (C * score_bytes + label_bytes + mask_bytes)

    try:
        vmem_cap = pltpu.get_tpu_info().vmem_capacity_bytes
    except Exception:
        vmem_cap = 64 * 1024 * 1024
    # Keep double-buffered input blocks well inside every chip's scoped-VMEM
    # default (v5e 16 MiB, v6e 32 MiB, v7x 32 MiB of 64 MiB physical).
    budget = min(8 * 1024 * 1024, vmem_cap // 8)
    max_rows_vmem = max(rpc, budget // (2 * bytes_per_row))

    if R <= rpc:
        # Tiny images: one tile, one chunk, block = exact extent.
        rpc = R
        rpt = R
    else:
        desired_rows = 1024                # ~128K px/tile amortises ~0.35us/step
        rpt = min(desired_rows, max_rows_vmem)
        rpt = max(rpc, (rpt // rpc) * rpc)
        rpt = min(rpt, (R // rpc) * rpc)
    assert rpt % rpc == 0
    num_j = pl.cdiv(R, rpt)

    spec_score = pl.BlockSpec((None, C, rpt, _LANES), lambda b, jj: (b, 0, jj, 0))
    spec_plane = pl.BlockSpec((None, rpt, _LANES), lambda b, jj: (b, jj, 0))

    in_specs = [spec_score, spec_plane]
    args = [score, labels]
    if has_mask:
        in_specs.append(spec_plane)
        args.append(mask_p)

    kernel = functools.partial(
        _dice_sums_kernel, num_classes=C, apply_softmax=softmax,
        has_mask=has_mask, num_rows=R, rows_per_tile=rpt, rows_per_chunk=rpc)

    sums = pl.pallas_call(
        kernel,
        out_shape=jax.ShapeDtypeStruct((B, C - 1, 3), jnp.float32),
        grid_spec=pltpu.PrefetchScalarGridSpec(
            num_scalar_prefetch=0,
            grid=(B, num_j),
            in_specs=in_specs,
            out_specs=pl.BlockSpec((None, C - 1, 3), lambda b, jj: (b, 0, 0)),
            scratch_shapes=[
                pltpu.VMEM((C - 1, rpc, _LANES), jnp.float32),
                pltpu.VMEM((C - 1, rpc, _LANES), jnp.float32),
                pltpu.VMEM((C - 1, rpc, _LANES), jnp.float32),
            ],
        ),
        compiler_params=pltpu.CompilerParams(
            dimension_semantics=("parallel", "arbitrary")),
    )(*args)

    # ---- tiny per-class combination (mirrors the PyTorch loop) -------------
    total = jnp.sum(sums, axis=0)                  # (C-1, 3): whole-batch sums
    smooth = 1e-5
    intersect = total[:, 0]
    y_sum = total[:, 1]
    z_sum = total[:, 2]
    dice = 1.0 - (2.0 * intersect + smooth) / (z_sum + y_sum + smooth)

    if weight is None:
        weight = [1.0] * C
    w = jnp.asarray(weight, jnp.float32)[1:]
    return jnp.sum(dice * w)


def _reference_loss(inputs, target, weight=None, softmax=False, mask=None):
    """Pure-JAX transcription of the PyTorch DiceLoss_DAT.forward."""
    B, C, H, W = inputs.shape
    x = inputs.astype(jnp.float32)
    if softmax:
        x = jax.nn.softmax(x, axis=1)
    tgt = target[:, 0] if target.ndim == 4 else target
    tgt = tgt.astype(jnp.float32)
    if mask is None:
        m = jnp.ones((B, H, W), jnp.float32)
    else:
        m = (mask.astype(jnp.float32) == 1.0).astype(jnp.float32)
    if weight is None:
        weight = [1.0] * C
    smooth = 1e-5
    loss = 0.0
    for i in range(1, C):
        s = x[:, i]
        t = (tgt == float(i)).astype(jnp.float32)   # torch: target == i (exact)
        intersect = jnp.sum(s * t * m)
        y_sum = jnp.sum(t * t * m)
        z_sum = jnp.sum(s * s * m)
        dice = (2.0 * intersect + smooth) / (z_sum + y_sum + smooth)
        loss = loss + (1.0 - dice) * float(weight[i])
    return loss


if __name__ == "__main__":
    key = jax.random.PRNGKey(0)
    k1, k2, k3, k4, k5, k6, k7, k8 = jax.random.split(key, 8)

    # Shapes implied by the module: NCHW logits, (B,1,H,W) label map, (B,H,W) mask.
    B, C, H, W = 2, 4, 16, 16
    logits = jax.random.normal(k1, (B, C, H, W), dtype=jnp.float32)
    labels = jax.random.randint(k2, (B, 1, H, W), 0, C).astype(jnp.float32)
    maskf = (jax.random.uniform(k3, (B, H, W)) > 0.3).astype(jnp.float32)

    # 1) softmax path, no mask.
    out = jax.block_until_ready(dice_loss_dat(logits, labels, softmax=True))
    ref = _reference_loss(logits, labels, softmax=True)
    assert bool(jnp.isfinite(out)), "non-finite loss (softmax path)"
    assert jnp.allclose(out, ref, rtol=1e-4, atol=1e-4), (out, ref)

    # 2) raw-score path with an explicit binary mask.
    out = jax.block_until_ready(dice_loss_dat(logits, labels, softmax=False, mask=maskf))
    ref = _reference_loss(logits, labels, softmax=False, mask=maskf)
    assert jnp.allclose(out, ref, rtol=1e-4, atol=1e-4), (out, ref)

    # 3) ragged H*W (not a multiple of 128) + per-class weights.
    lg2 = jax.random.normal(k4, (1, 3, 9, 13), dtype=jnp.float32)
    lb2 = jax.random.randint(k5, (1, 1, 9, 13), 0, 3).astype(jnp.float32)
    w2 = [0.0, 0.7, 1.3]
    out = jax.block_until_ready(dice_loss_dat(lg2, lb2, weight=w2, softmax=True))
    ref = _reference_loss(lg2, lb2, weight=w2, softmax=True)
    assert jnp.allclose(out, ref, rtol=1e-4, atol=1e-4), (out, ref)

    # 4) multi-row-tile grid + chunked inner loop + ragged last row tile + mask.
    B3, C3, H3, W3 = 2, 4, 96, 96
    lg3 = jax.random.normal(k6, (B3, C3, H3, W3), dtype=jnp.float32)
    lb3 = jax.random.randint(k7, (B3, 1, H3, W3), 0, C3).astype(jnp.float32)
    m3 = (jax.random.uniform(k8, (B3, H3, W3)) > 0.5).astype(jnp.float32)
    out = jax.block_until_ready(dice_loss_dat(lg3, lb3, softmax=True, mask=m3))
    ref = _reference_loss(lg3, lb3, softmax=True, mask=m3)
    assert jnp.allclose(out, ref, rtol=1e-4, atol=1e-4), (out, ref)

    print("KERNEL_OK")
</pallas_src>

<mosaic_0001>
module attributes {stable_mosaic.version = 11 : i64} {
  func.func @_dice_sums_kernel(%arg0: i32, %arg1: i32, %arg2: memref<1x4x2x128xf32, #tpu.memory_space<vmem>>, %arg3: memref<1x2x128xf32, #tpu.memory_space<vmem>>, %arg4: memref<1x3x3xf32, #tpu.memory_space<vmem>>, %arg5: memref<3x2x128xf32, #tpu.memory_space<vmem>>, %arg6: memref<3x2x128xf32, #tpu.memory_space<vmem>>, %arg7: memref<3x2x128xf32, #tpu.memory_space<vmem>>) attributes {dimension_semantics = [#tpu.dimension_semantics<parallel>, #tpu.dimension_semantics<arbitrary>], iteration_bounds = array<i64: 2, 1>, scalar_prefetch = 0 : i64, scratch_operands = 3 : i64, tpu.core_type = #tpu.core_type<tc>, window_params = [{transform_indices = @transform_0, window_bounds = array<i64: 1, 4, 2, 128>}, {transform_indices = @transform_1, window_bounds = array<i64: 1, 2, 128>}, {transform_indices = @transform_2, window_bounds = array<i64: 1, 3, 3>}]} {
    %c0_i32 = arith.constant 0 : i32
    %0 = arith.cmpi eq, %arg1, %c0_i32 : i32
    %1 = arith.extui %0 : i1 to i32
    %c0_i32_0 = arith.constant 0 : i32
    %2 = arith.cmpi ne, %1, %c0_i32_0 : i32
    scf.if %2 {
      %cst_76 = arith.constant 0.000000e+00 : f32
      %112 = vector.broadcast %cst_76 : f32 to vector<3x2x128xf32>
      %c0_77 = arith.constant 0 : index
      %c0_78 = arith.constant 0 : index
      %c0_79 = arith.constant 0 : index
      %113 = vector.load %arg5[%c0_77, %c0_78, %c0_79] : memref<3x2x128xf32, #tpu.memory_space<vmem>>, vector<3x2x128xf32>
      tpu.vector_store %arg5[%c0_77, %c0_78, %c0_79], %112 {strides = array<i32>} : memref<3x2x128xf32, #tpu.memory_space<vmem>>, vector<3x2x128xf32>,
      %cst_80 = arith.constant 0.000000e+00 : f32
      %114 = vector.broadcast %cst_80 : f32 to vector<3x2x128xf32>
      %c0_81 = arith.constant 0 : index
      %c0_82 = arith.constant 0 : index
      %c0_83 = arith.constant 0 : index
      %115 = vector.load %arg6[%c0_81, %c0_82, %c0_83] : memref<3x2x128xf32, #tpu.memory_space<vmem>>, vector<3x2x128xf32>
      tpu.vector_store %arg6[%c0_81, %c0_82, %c0_83], %114 {strides = array<i32>} : memref<3x2x128xf32, #tpu.memory_space<vmem>>, vector<3x2x128xf32>,
      %cst_84 = arith.constant 0.000000e+00 : f32
      %116 = vector.broadcast %cst_84 : f32 to vector<3x2x128xf32>
      %c0_85 = arith.constant 0 : index
      %c0_86 = arith.constant 0 : index
      %c0_87 = arith.constant 0 : index
      %117 = vector.load %arg7[%c0_85, %c0_86, %c0_87] : memref<3x2x128xf32, #tpu.memory_space<vmem>>, vector<3x2x128xf32>
      tpu.vector_store %arg7[%c0_85, %c0_86, %c0_87], %116 {strides = array<i32>} : memref<3x2x128xf32, #tpu.memory_space<vmem>>, vector<3x2x128xf32>,
    } else {
    }
    %c0 = arith.constant 0 : index
    %c0_1 = arith.constant 0 : index
    %c0_2 = arith.constant 0 : index
    %c0_3 = arith.constant 0 : index
    %3 = vector.load %arg2[%c0, %c0_1, %c0_2, %c0_3] : memref<1x4x2x128xf32, #tpu.memory_space<vmem>>, vector<1x4x2x128xf32>
    %4 = vector.shape_cast %3 : vector<1x4x2x128xf32> to vector<4x2x128xf32>
    %c0_4 = arith.constant 0 : index
    %c0_5 = arith.constant 0 : index
    %c0_6 = arith.constant 0 : index
    %5 = vector.load %arg3[%c0_4, %c0_5, %c0_6] : memref<1x2x128xf32, #tpu.memory_space<vmem>>, vector<1x2x128xf32>
    %6 = vector.shape_cast %5 : vector<1x2x128xf32> to vector<2x128xf32>
    %cst = arith.constant dense<0xFF800000> : vector<2x128xf32>
    %7 = vector.multi_reduction <maximumf>, %4, %cst [0] : vector<4x2x128xf32> to vector<2x128xf32>
    %8 = vector.shape_cast %7 : vector<2x128xf32> to vector<1x2x128xf32>
    %9 = vector.broadcast %8 : vector<1x2x128xf32> to vector<4x2x128xf32>
    %10 = arith.subf %4, %9 : vector<4x2x128xf32>
    %11 = math.exp %10 : vector<4x2x128xf32>
    %cst_7 = arith.constant dense<0.000000e+00> : vector<2x128xf32>
    %12 = vector.multi_reduction <add>, %11, %cst_7 [0] : vector<4x2x128xf32> to vector<2x128xf32>
    %13 = vector.shape_cast %12 : vector<2x128xf32> to vector<1x2x128xf32>
    %14 = tpu.reciprocal %13 {approx = true} : vector<1x2x128xf32> -> vector<1x2x128xf32>
    %15 = arith.mulf %13, %14 : vector<1x2x128xf32>
    %cst_8 = arith.constant 2.000000e+00 : f32
    %16 = vector.broadcast %cst_8 : f32 to vector<1x2x128xf32>
    %17 = arith.subf %16, %15 : vector<1x2x128xf32>
    %18 = arith.mulf %14, %17 : vector<1x2x128xf32>
    %19 = arith.mulf %13, %18 : vector<1x2x128xf32>
    %cst_9 = arith.constant 2.000000e+00 : f32
    %20 = vector.broadcast %cst_9 : f32 to vector<1x2x128xf32>
    %21 = arith.subf %20, %19 : vector<1x2x128xf32>
    %22 = arith.mulf %18, %21 : vector<1x2x128xf32>
    %23 = vector.broadcast %22 : vector<1x2x128xf32> to vector<4x2x128xf32>
    %24 = arith.mulf %11, %23 : vector<4x2x128xf32>
    %25 = vector.extract_strided_slice %24 {offsets = [1, 0, 0], sizes = [1, 2, 128], strides = [1, 1, 1]} : vector<4x2x128xf32> to vector<1x2x128xf32>
    %26 = vector.shape_cast %25 : vector<1x2x128xf32> to vector<2x128xf32>
    %cst_10 = arith.constant 1.000000e+00 : f32
    %27 = vector.broadcast %cst_10 : f32 to vector<2x128xf32>
    %28 = arith.cmpf oeq, %6, %27 : vector<2x128xf32>
    %cst_11 = arith.constant 0.000000e+00 : f32
    %29 = vector.broadcast %cst_11 : f32 to vector<2x128xf32>
    %30 = arith.select %28, %26, %29 : vector<2x128xi1>, vector<2x128xf32>
    %cst_12 = arith.constant 1.000000e+00 : f32
    %cst_13 = arith.constant 0.000000e+00 : f32
    %31 = vector.broadcast %cst_12 : f32 to vector<2x128xf32>
    %32 = vector.broadcast %cst_13 : f32 to vector<2x128xf32>
    %33 = arith.select %28, %31, %32 : vector<2x128xi1>, vector<2x128xf32>
    %34 = arith.mulf %26, %26 : vector<2x128xf32>
    %c0_14 = arith.constant 0 : index
    %c0_15 = arith.constant 0 : index
    %c0_16 = arith.constant 0 : index
    %35 = vector.load %arg5[%c0_14, %c0_15, %c0_16] : memref<3x2x128xf32, #tpu.memory_space<vmem>>, vector<1x2x128xf32>
    %36 = vector.shape_cast %35 : vector<1x2x128xf32> to vector<2x128xf32>
    %37 = arith.addf %36, %30 : vector<2x128xf32>
    %c0_17 = arith.constant 0 : index
    %c0_18 = arith.constant 0 : index
    %c0_19 = arith.constant 0 : index
    %38 = vector.load %arg5[%c0_17, %c0_18, %c0_19] : memref<3x2x128xf32, #tpu.memory_space<vmem>>, vector<1x2x128xf32>
    %39 = vector.shape_cast %38 : vector<1x2x128xf32> to vector<2x128xf32>
    %40 = vector.shape_cast %37 : vector<2x128xf32> to vector<1x2x128xf32>
    tpu.vector_store %arg5[%c0_17, %c0_18, %c0_19], %40 {strides = array<i32>} : memref<3x2x128xf32, #tpu.memory_space<vmem>>, vector<1x2x128xf32>,
    %c0_20 = arith.constant 0 : index
    %c0_21 = arith.constant 0 : index
    %c0_22 = arith.constant 0 : index
    %41 = vector.load %arg6[%c0_20, %c0_21, %c0_22] : memref<3x2x128xf32, #tpu.memory_space<vmem>>, vector<1x2x128xf32>
    %42 = vector.shape_cast %41 : vector<1x2x128xf32> to vector<2x128xf32>
    %43 = arith.addf %42, %33 : vector<2x128xf32>
    %c0_23 = arith.constant 0 : index
    %c0_24 = arith.constant 0 : index
    %c0_25 = arith.constant 0 : index
    %44 = vector.load %arg6[%c0_23, %c0_24, %c0_25] : memref<3x2x128xf32, #tpu.memory_space<vmem>>, vector<1x2x128xf32>
    %45 = vector.shape_cast %44 : vector<1x2x128xf32> to vector<2x128xf32>
    %46 = vector.shape_cast %43 : vector<2x128xf32> to vector<1x2x128xf32>
    tpu.vector_store %arg6[%c0_23, %c0_24, %c0_25], %46 {strides = array<i32>} : memref<3x2x128xf32, #tpu.memory_space<vmem>>, vector<1x2x128xf32>,
    %c0_26 = arith.constant 0 : index
    %c0_27 = arith.constant 0 : index
    %c0_28 = arith.constant 0 : index
    %47 = vector.load %arg7[%c0_26, %c0_27, %c0_28] : memref<3x2x128xf32, #tpu.memory_space<vmem>>, vector<1x2x128xf32>
    %48 = vector.shape_cast %47 : vector<1x2x128xf32> to vector<2x128xf32>
    %49 = arith.addf %48, %34 : vector<2x128xf32>
    %c0_29 = arith.constant 0 : index
    %c0_30 = arith.constant 0 : index
    %c0_31 = arith.constant 0 : index
    %50 = vector.load %arg7[%c0_29, %c0_30, %c0_31] : memref<3x2x128xf32, #tpu.memory_space<vmem>>, vector<1x2x128xf32>
    %51 = vector.shape_cast %50 : vector<1x2x128xf32> to vector<2x128xf32>
    %52 = vector.shape_cast %49 : vector<2x128xf32> to vector<1x2x128xf32>
    tpu.vector_store %arg7[%c0_29, %c0_30, %c0_31], %52 {strides = array<i32>} : memref<3x2x128xf32, #tpu.memory_space<vmem>>, vector<1x2x128xf32>,
    %53 = vector.extract_strided_slice %24 {offsets = [2, 0, 0], sizes = [1, 2, 128], strides = [1, 1, 1]} : vector<4x2x128xf32> to vector<1x2x128xf32>
    %54 = vector.shape_cast %53 : vector<1x2x128xf32> to vector<2x128xf32>
    %cst_32 = arith.constant 2.000000e+00 : f32
    %55 = vector.broadcast %cst_32 : f32 to vector<2x128xf32>
    %56 = arith.cmpf oeq, %6, %55 : vector<2x128xf32>
    %cst_33 = arith.constant 0.000000e+00 : f32
    %57 = vector.broadcast %cst_33 : f32 to vector<2x128xf32>
    %58 = arith.select %56, %54, %57 : vector<2x128xi1>, vector<2x128xf32>
    %cst_34 = arith.constant 1.000000e+00 : f32
    %cst_35 = arith.constant 0.000000e+00 : f32
    %59 = vector.broadcast %cst_34 : f32 to vector<2x128xf32>
    %60 = vector.broadcast %cst_35 : f32 to vector<2x128xf32>
    %61 = arith.select %56, %59, %60 : vector<2x128xi1>, vector<2x128xf32>
    %62 = arith.mulf %54, %54 : vector<2x128xf32>
    %c1 = arith.constant 1 : index
    %c0_36 = arith.constant 0 : index
    %c0_37 = arith.constant 0 : index
    %63 = vector.load %arg5[%c1, %c0_36, %c0_37] : memref<3x2x128xf32, #tpu.memory_space<vmem>>, vector<1x2x128xf32>
    %64 = vector.shape_cast %63 : vector<1x2x128xf32> to vector<2x128xf32>
    %65 = arith.addf %64, %58 : vector<2x128xf32>
    %c1_38 = arith.constant 1 : index
    %c0_39 = arith.constant 0 : index
    %c0_40 = arith.constant 0 : index
    %66 = vector.load %arg5[%c1_38, %c0_39, %c0_40] : memref<3x2x128xf32, #tpu.memory_space<vmem>>, vector<1x2x128xf32>
    %67 = vector.shape_cast %66 : vector<1x2x128xf32> to vector<2x128xf32>
    %68 = vector.shape_cast %65 : vector<2x128xf32> to vector<1x2x128xf32>
    tpu.vector_store %arg5[%c1_38, %c0_39, %c0_40], %68 {strides = array<i32>} : memref<3x2x128xf32, #tpu.memory_space<vmem>>, vector<1x2x128xf32>,
    %c1_41 = arith.constant 1 : index
    %c0_42 = arith.constant 0 : index
    %c0_43 = arith.constant 0 : index
    %69 = vector.load %arg6[%c1_41, %c0_42, %c0_43] : memref<3x2x128xf32, #tpu.memory_space<vmem>>, vector<1x2x128xf32>
    %70 = vector.shape_cast %69 : vector<1x2x128xf32> to vector<2x128xf32>
    %71 = arith.addf %70, %61 : vector<2x128xf32>
    %c1_44 = arith.constant 1 : index
    %c0_45 = arith.constant 0 : index
    %c0_46 = arith.constant 0 : index
    %72 = vector.load %arg6[%c1_44, %c0_45, %c0_46] : memref<3x2x128xf32, #tpu.memory_space<vmem>>, vector<1x2x128xf32>
    %73 = vector.shape_cast %72 : vector<1x2x128xf32> to vector<2x128xf32>
    %74 = vector.shape_cast %71 : vector<2x128xf32> to vector<1x2x128xf32>
    tpu.vector_store %arg6[%c1_44, %c0_45, %c0_46], %74 {strides = array<i32>} : memref<3x2x128xf32, #tpu.memory_space<vmem>>, vector<1x2x128xf32>,
    %c1_47 = arith.constant 1 : index
    %c0_48 = arith.constant 0 : index
    %c0_49 = arith.constant 0 : index
    %75 = vector.load %arg7[%c1_47, %c0_48, %c0_49] : memref<3x2x128xf32, #tpu.memory_space<vmem>>, vector<1x2x128xf32>
    %76 = vector.shape_cast %75 : vector<1x2x128xf32> to vector<2x128xf32>
    %77 = arith.addf %76, %62 : vector<2x128xf32>
    %c1_50 = arith.constant 1 : index
    %c0_51 = arith.constant 0 : index
    %c0_52 = arith.constant 0 : index
    %78 = vector.load %arg7[%c1_50, %c0_51, %c0_52] : memref<3x2x128xf32, #tpu.memory_space<vmem>>, vector<1x2x128xf32>
    %79 = vector.shape_cast %78 : vector<1x2x128xf32> to vector<2x128xf32>
    %80 = vector.shape_cast %77 : vector<2x128xf32> to vector<1x2x128xf32>
    tpu.vector_store %arg7[%c1_50, %c0_51, %c0_52], %80 {strides = array<i32>} : memref<3x2x128xf32, #tpu.memory_space<vmem>>, vector<1x2x128xf32>,
    %81 = vector.extract_strided_slice %24 {offsets = [3, 0, 0], sizes = [1, 2, 128], strides = [1, 1, 1]} : vector<4x2x128xf32> to vector<1x2x128xf32>
    %82 = vector.shape_cast %81 : vector<1x2x128xf32> to vector<2x128xf32>
    %cst_53 = arith.constant 3.000000e+00 : f32
    %83 = vector.broadcast %cst_53 : f32 to vector<2x128xf32>
    %84 = arith.cmpf oeq, %6, %83 : vector<2x128xf32>
    %cst_54 = arith.constant 0.000000e+00 : f32
    %85 = vector.broadcast %cst_54 : f32 to vector<2x128xf32>
    %86 = arith.select %84, %82, %85 : vector<2x128xi1>, vector<2x128xf32>
    %cst_55 = arith.constant 1.000000e+00 : f32
    %cst_56 = arith.constant 0.000000e+00 : f32
    %87 = vector.broadcast %cst_55 : f32 to vector<2x128xf32>
    %88 = vector.broadcast %cst_56 : f32 to vector<2x128xf32>
    %89 = arith.select %84, %87, %88 : vector<2x128xi1>, vector<2x128xf32>
    %90 = arith.mulf %82, %82 : vector<2x128xf32>
    %c2 = arith.constant 2 : index
    %c0_57 = arith.constant 0 : index
    %c0_58 = arith.constant 0 : index
    %91 = vector.load %arg5[%c2, %c0_57, %c0_58] : memref<3x2x128xf32, #tpu.memory_space<vmem>>, vector<1x2x128xf32>
    %92 = vector.shape_cast %91 : vector<1x2x128xf32> to vector<2x128xf32>
    %93 = arith.addf %92, %86 : vector<2x128xf32>
    %c2_59 = arith.constant 2 : index
    %c0_60 = arith.constant 0 : index
    %c0_61 = arith.constant 0 : index
    %94 = vector.load %arg5[%c2_59, %c0_60, %c0_61] : memref<3x2x128xf32, #tpu.memory_space<vmem>>, vector<1x2x128xf32>
    %95 = vector.shape_cast %94 : vector<1x2x128xf32> to vector<2x128xf32>
    %96 = vector.shape_cast %93 : vector<2x128xf32> to vector<1x2x128xf32>
    tpu.vector_store %arg5[%c2_59, %c0_60, %c0_61], %96 {strides = array<i32>} : memref<3x2x128xf32, #tpu.memory_space<vmem>>, vector<1x2x128xf32>,
    %c2_62 = arith.constant 2 : index
    %c0_63 = arith.constant 0 : index
    %c0_64 = arith.constant 0 : index
    %97 = vector.load %arg6[%c2_62, %c0_63, %c0_64] : memref<3x2x128xf32, #tpu.memory_space<vmem>>, vector<1x2x128xf32>
    %98 = vector.shape_cast %97 : vector<1x2x128xf32> to vector<2x128xf32>
    %99 = arith.addf %98, %89 : vector<2x128xf32>
    %c2_65 = arith.constant 2 : index
    %c0_66 = arith.constant 0 : index
    %c0_67 = arith.constant 0 : index
    %100 = vector.load %arg6[%c2_65, %c0_66, %c0_67] : memref<3x2x128xf32, #tpu.memory_space<vmem>>, vector<1x2x128xf32>
    %101 = vector.shape_cast %100 : vector<1x2x128xf32> to vector<2x128xf32>
    %102 = vector.shape_cast %99 : vector<2x128xf32> to vector<1x2x128xf32>
    tpu.vector_store %arg6[%c2_65, %c0_66, %c0_67], %102 {strides = array<i32>} : memref<3x2x128xf32, #tpu.memory_space<vmem>>, vector<1x2x128xf32>,
    %c2_68 = arith.constant 2 : index
    %c0_69 = arith.constant 0 : index
    %c0_70 = arith.constant 0 : index
    %103 = vector.load %arg7[%c2_68, %c0_69, %c0_70] : memref<3x2x128xf32, #tpu.memory_space<vmem>>, vector<1x2x128xf32>
    %104 = vector.shape_cast %103 : vector<1x2x128xf32> to vector<2x128xf32>
    %105 = arith.addf %104, %90 : vector<2x128xf32>
    %c2_71 = arith.constant 2 : index
    %c0_72 = arith.constant 0 : index
    %c0_73 = arith.constant 0 : index
    %106 = vector.load %arg7[%c2_71, %c0_72, %c0_73] : memref<3x2x128xf32, #tpu.memory_space<vmem>>, vector<1x2x128xf32>
    %107 = vector.shape_cast %106 : vector<1x2x128xf32> to vector<2x128xf32>
    %108 = vector.shape_cast %105 : vector<2x128xf32> to vector<1x2x128xf32>
    tpu.vector_store %arg7[%c2_71, %c0_72, %c0_73], %108 {strides = array<i32>} : memref<3x2x128xf32, #tpu.memory_space<vmem>>, vector<1x2x128xf32>,
    %c0_i32_74 = arith.constant 0 : i32
    %109 = arith.cmpi eq, %arg1, %c0_i32_74 : i32
    %110 = arith.extui %109 : i1 to i32
    %c0_i32_75 = arith.constant 0 : i32
    %111 = arith.cmpi ne, %110, %c0_i32_75 : i32
    scf.if %111 {
      %c0_76 = arith.constant 0 : index
      %c0_77 = arith.constant 0 : index
      %c0_78 = arith.constant 0 : index
      %112 = vector.load %arg5[%c0_76, %c0_77, %c0_78] : memref<3x2x128xf32, #tpu.memory_space<vmem>>, vector<3x2x128xf32>
      %cst_79 = arith.constant dense<0.000000e+00> : vector<3x2xf32>
      %113 = vector.multi_reduction <add>, %112, %cst_79 [2] : vector<3x2x128xf32> to vector<3x2xf32>
      %114 = vector.shape_cast %113 : vector<3x2xf32> to vector<3x2x1xf32>
      %cst_80 = arith.constant dense<0.000000e+00> : vector<3x1xf32>
      %115 = vector.multi_reduction <add>, %114, %cst_80 [1] : vector<3x2x1xf32> to vector<3x1xf32>
      %c0_81 = arith.constant 0 : index
      %c0_82 = arith.constant 0 : index
      %c0_83 = arith.constant 0 : index
      %116 = vector.load %arg6[%c0_81, %c0_82, %c0_83] : memref<3x2x128xf32, #tpu.memory_space<vmem>>, vector<3x2x128xf32>
      %cst_84 = arith.constant dense<0.000000e+00> : vector<3x2xf32>
      %117 = vector.multi_reduction <add>, %116, %cst_84 [2] : vector<3x2x128xf32> to vector<3x2xf32>
      %118 = vector.shape_cast %117 : vector<3x2xf32> to vector<3x2x1xf32>
      %cst_85 = arith.constant dense<0.000000e+00> : vector<3x1xf32>
      %119 = vector.multi_reduction <add>, %118, %cst_85 [1] : vector<3x2x1xf32> to vector<3x1xf32>
      %c0_86 = arith.constant 0 : index
      %c0_87 = arith.constant 0 : index
      %c0_88 = arith.constant 0 : index
      %120 = vector.load %arg7[%c0_86, %c0_87, %c0_88] : memref<3x2x128xf32, #tpu.memory_space<vmem>>, vector<3x2x128xf32>
      %cst_89 = arith.constant dense<0.000000e+00> : vector<3x2xf32>
      %121 = vector.multi_reduction <add>, %120, %cst_89 [2] : vector<3x2x128xf32> to vector<3x2xf32>
      %122 = vector.shape_cast %121 : vector<3x2xf32> to vector<3x2x1xf32>
      %cst_90 = arith.constant dense<0.000000e+00> : vector<3x1xf32>
      %123 = vector.multi_reduction <add>, %122, %cst_90 [1] : vector<3x2x1xf32> to vector<3x1xf32>
      %124 = tpu.concatenate %115, %119, %123 in 1 : vector<3x1xf32>, vector<3x1xf32>, vector<3x1xf32> -> vector<3x3xf32>
      %c0_91 = arith.constant 0 : index
      %c0_92 = arith.constant 0 : index
      %c0_93 = arith.constant 0 : index
      %125 = vector.load %arg4[%c0_91, %c0_92, %c0_93] : memref<1x3x3xf32, #tpu.memory_space<vmem>>, vector<1x3x3xf32>
      %126 = vector.shape_cast %125 : vector<1x3x3xf32> to vector<3x3xf32>
      %127 = vector.shape_cast %124 : vector<3x3xf32> to vector<1x3x3xf32>
      tpu.vector_store %arg4[%c0_91, %c0_92, %c0_93], %127 {strides = array<i32>} : memref<1x3x3xf32, #tpu.memory_space<vmem>>, vector<1x3x3xf32>,
    } else {
    }
    return
  }
  func.func @transform_0(%arg0: i32, %arg1: i32) -> (i32, i32, i32, i32) {
    %c0_i32 = arith.constant 0 : i32
    %c0_i32_0 = arith.constant 0 : i32
    %c0_i32_1 = arith.constant 0 : i32
    return %arg0, %c0_i32, %arg1, %c0_i32_0 : i32, i32, i32, i32
  }
  func.func @transform_1(%arg0: i32, %arg1: i32) -> (i32, i32, i32) {
    %c0_i32 = arith.constant 0 : i32
    %c0_i32_0 = arith.constant 0 : i32
    return %arg0, %arg1, %c0_i32 : i32, i32, i32
  }
  func.func @transform_2(%arg0: i32, %arg1: i32) -> (i32, i32, i32) {
    %c0_i32 = arith.constant 0 : i32
    %c0_i32_0 = arith.constant 0 : i32
    %c0_i32_1 = arith.constant 0 : i32
    return %arg0, %c0_i32, %c0_i32_0 : i32, i32, i32
  }
}

</mosaic_0001>

<bundles_post_ra>
// kernel: tpu_custom_call.1
= control target key start
LH: loop header
LB: loop body
LE: loop exit
PB: predicated region body
PF: predicated region fallthrough
CT: control target
= control target key end

     0   :  { %7 = vsyncpa [#allocation6], 0  ;;  %s985_s0 = inlined_call_operand.hbm [shape: f32[2,4,2,128], index: 0, kind: input, shape index: {}]   ;;  %s986_s1 = inlined_call_operand.hbm [shape: f32[2,2,128], index: 1, kind: input, shape index: {}]   ;;  %s987_s2 = inlined_call_operand.vmem [shape: f32[2,3,3], index: 2, kind: output, shape index: {}]  }
   0x1   :  { %9 = vsyncpa [#allocation6 + $0x1], 0 }
   0x2   :  { %10 = vsyncpa [#allocation8], 0 }
   0x3   :  { %12 = vsyncpa [#allocation8 + $0x1], 0  ;;  %s769_s9 = smov 0   ;;  %s771_s10 = smov 0  }
   0x4   :  { %s773_s11 = smov 0   ;;  %s775_s12 = smov 0  }
   0x5   :  { %s777_s13 = smov 0   ;;  %s779_s14 = smov 0  }
   0x6 LB: > { %s544_s15 = sadd.s32 4294967295, %s747_s14   ;;  %s30_s16 = sadd.s32 1, %s743_s13  ;;  %s747_s14 = sphi %s779_s14, %s18_s14   ;;  %s743_s13 = sphi %s777_s13, %s999_s13   ;;  %s739_s12 = sphi %s775_s12, %s998_s12   ;;  %s735_s11 = sphi %s773_s11, %s997_s11   ;;  %s731_s10 = sphi %s771_s10, %s996_s10   ;;  %s727_s9 = sphi %s769_s9, %s995_s9  }
   0x7   : > { %p32_p0 = scmp.ge.s32.totalorder %s30_s16, 2  ;;  %s39_s17 = sadd.s32 1, %s735_s11 }
   0x8   : > { %p46_p1 = scmp.ne.s32.totalorder %s735_s11, %s731_s10  ;;  %p47_p2 = scmp.eq.s32.totalorder %s747_s14, 0 }
   0x9   : > { %s1001_s16 = smov (%p32_p0, %s30_s16), 0  ;;  %p52_p4 = scmp.ne.s32.totalorder %s731_s10, %s727_s9 }
   0xa   : > { %p805_p3 = por %p47_p2, %p46_p1  ;;  %s34_s19 = ssub.s32 %s743_s13, %s1001_s16 }
   0xb   : > { %p53_p5 = scmp.eq.s32.totalorder %s544_s15, 0  ;;  %p37_p6 = scmp.eq.s32.totalorder %s34_s19, 0 }
   0xc   : > { %p571_p8 = scmp.lt.s32.totalorder %s747_s14, 2  ;;  %s821_s22 = sand.u32 1, %s735_s11  }
   0xd   : > { %p812_p7 = por %p53_p5, %p52_p4  ;;  %s559_s23 = sshll.u32 %s743_s13, 7 }
   0xe   : > { %s818_s21 = scalar_select %p37_p6, %s735_s11, %s39_s17  }
   0xf   : > { %s990_s20 = scalar_select %p812_p7, 1, 0 }
  0x10   : > { %s548_s24 = sshll.u32 %s821_s22, 3  ;;  %s828_s27 = scalar_lea.hbm %s985_s0, %s559_s23 }
  0x11   : > { %s134_s28 = scalar_lea.vmem [#allocation5], %s548_s24  ;;  %p832_p9 = pnand %p571_p8, %p805_p3 }
  0x12   : > { %s142_s29 = sshll.u32 %s134_s28, 4  ;;  %s131_s3 = scalar_lea.sflag [#allocation6], %s821_s22  ;;  %s836_s29 = int_to_ptr.vmem [resolvable:$true] %s142_s29 }
  0x13   : > { %s633_s4 = scalar_lea.hbm %s828_s27, 128  ;;  %p635_p11 = pneg %p832_p9 }
  0x14   : > { %p634_p10 = scmp.ne.s32.totalorder %s828_s27, %s633_s4  ;;  %s638_s7 = scalar_lea.hbm %s985_s0, 256 }
  0x15   : > { %p639_p0 = scmp.lt.u32.totalorder %s828_s27, %s985_s0  ;;  %p640_p1 = scmp.lt.u32.totalorder %s638_s7, %s633_s4 }
  0x16   : > { %p636_p12 = pnand %p635_p11, %p634_p10  ;;  %p642_p3 = scmp.lt.u32.totalorder %s633_s4, %s828_s27 }
  0x17   : > { %p641_p2 = por %p640_p1, %p639_p0 }
  0x18   : > { %p637_p13 = pneg %p636_p12 }
  0x19   : > { %p643_p4 = por %p642_p3, %p641_p2 }
  0x1b   : > { %p644_p5 = pnand %p643_p4, %p637_p13 }
  0x1d   : > { %647 = shalt.err (!%p644_p5)
}
  0x1e   : > { %s648_s15 = scalar_lea.vmem %s836_s29, 128  ;;  %s749_s17 = smov [#allocation5]  }
  0x1f   : > { %p649_p6 = scmp.ne.s32.totalorder %s836_s29, %s648_s15  ;;  %s653_s18 = sshll.u32 %s749_s17, 4  ;;  %s654_s18 = int_to_ptr.vmem [resolvable:$false] %s653_s18 }
  0x20   : > { %s655_s19 = scalar_lea.vmem %s654_s18, 256  ;;  %p656_p12 = scmp.lt.s32.totalorder %s836_s29, %s654_s18 }
  0x21   : > { %p651_p8 = pnand %p649_p6, %p635_p11  ;;  %p657_p0 = scmp.lt.s32.totalorder %s655_s19, %s648_s15 }
  0x23   : > { %p652_p10 = pneg %p651_p8  ;;  %p658_p1 = por %p657_p0, %p656_p12 }
  0x25   : > { %p659_p2 = pnand %p658_p1, %p652_p10 }
  0x27   : > { %662 = shalt.err (!%p659_p2)
}
  0x28   : > { %s750_s23 = smov 32   ;;  %s751_s24 = smov 2  }
  0x29   : > { %567 = dma.hbm_to_vmem [thread:$0]  (!%p832_p9), %s828_s27, 128, %s836_s29, %s131_s3, %s750_s23, %s750_s23, %s751_s24  }
  0x2a   : > { %p553_p13 = scmp.ge.s32.totalorder %s747_s14, 1  ;;  %p169_p3 = scmp.lt.s32.totalorder %s747_s14, 3 }
  0x2b   : > { %s551_s25 = sshll.u32 %s821_s22, 1  ;;  %s552_s28 = sshll.u32 %s743_s13, 5 }
  0x2c   : > { %p869_p4 = pnand %p553_p13, %p169_p3  ;;  %s156_s4 = scalar_lea.vmem [#allocation7], %s551_s25 }
  0x2d   : > { %s164_s5 = sshll.u32 %s156_s4, 4  ;;  %s877_s8 = scalar_lea.hbm %s986_s1, %s552_s28  ;;  %s165_s5 = int_to_ptr.vmem [resolvable:$true] %s164_s5 }
  0x2e   : > { %s992_s26 = scalar_select %p869_p4, 1, 0 }
  0x2f   : > { %s153_s27 = scalar_lea.sflag [#allocation8], %s821_s22  ;;  %s663_s29 = scalar_lea.hbm %s877_s8, 32 }
  0x30   : > { %p664_p5 = scmp.ne.s32.totalorder %s877_s8, %s663_s29  ;;  %s668_s15 = scalar_lea.hbm %s986_s1, 64 }
  0x31   : > { %p669_p10 = scmp.lt.u32.totalorder %s877_s8, %s986_s1  ;;  %p670_p12 = scmp.lt.u32.totalorder %s668_s15, %s663_s29 }
  0x32   : > { %p666_p6 = pnand %p664_p5, %p635_p11  ;;  %p672_p1 = scmp.lt.u32.totalorder %s663_s29, %s877_s8 }
  0x33   : > { %p671_p0 = por %p670_p12, %p669_p10 }
  0x34   : > { %p667_p8 = pneg %p666_p6 }
  0x35   : > { %p673_p2 = por %p672_p1, %p671_p0 }
  0x37   : > { %p674_p13 = pnand %p673_p2, %p667_p8 }
  0x39   : > { %677 = shalt.err (!%p674_p13)
}
  0x3a   : > { %s678_s22 = scalar_lea.vmem %s165_s5, 32  ;;  %s752_s19 = smov [#allocation7]  }
  0x3b   : > { %p679_p3 = scmp.ne.s32.totalorder %s165_s5, %s678_s22  ;;  %s683_s23 = sshll.u32 %s752_s19, 4  ;;  %s684_s23 = int_to_ptr.vmem [resolvable:$false] %s683_s23 }
  0x3c   : > { %s685_s24 = scalar_lea.vmem %s684_s23, 64  ;;  %p686_p7 = scmp.lt.s32.totalorder %s165_s5, %s684_s23 }
  0x3d   : > { %p681_p5 = pnand %p679_p3, %p635_p11  ;;  %p687_p4 = scmp.lt.s32.totalorder %s685_s24, %s678_s22 }
  0x3f   : > { %p682_p6 = pneg %p681_p5  ;;  %p688_p10 = por %p687_p4, %p686_p7 }
  0x41   : > { %p689_p12 = pnand %p688_p10, %p682_p6 }
  0x43   : > { %692 = shalt.err (!%p689_p12)
}
  0x44   : > { %570 = dma.hbm_to_vmem [thread:$0]  (!%p832_p9), %s877_s8, 32, %s165_s5, %s153_s27  }
  0x45   : > { %p993_p8 = scmp.ne.s32.totalorder %s992_s26, 0 }
  0x46   : > { %s175_s25 = sand.u32 (!%p993_p8), 1, %s731_s10   ;;  %p994_p11 = scmp.ne.s32.totalorder (!%p993_p8), %s990_s20, 0 }
  0x47   : > { %173 = sbr.rel (%p993_p8) target bundleno = 328 (0x148), region = 28  ;;  %s554_s28 = sshll.u32 (!%p993_p8), %s175_s25, 3 }
  0x48   : > { %s176_s4 = scalar_lea.sflag (!%p993_p8), [#allocation6], %s175_s25  ;;  %s902_s6 = scalar_lea.vmem (!%p993_p8), [#allocation5], %s554_s28 }
  0x4e   : > { %718 = dma.done.wait (%p994_p11), %s176_s4, 128  }
  0x4f   : > { %720 = vsyncadd (%p994_p11), %s176_s4, 4294967168  ;;  %s555_s7 = sshll.u32 %s175_s25, 1  ;;  %s185_s30 = scalar_lea.sflag [#allocation8], %s175_s25 }
  0x50   : > { %s188_s29 = scalar_lea.vmem [#allocation7], %s555_s7 }
  0x51   : > { %722 = dma.done.wait (%p994_p11), %s185_s30, 32  }
  0x52   : > { %724 = vsyncadd (%p994_p11), %s185_s30, 4294967264  ;;  %v753_v0 = vmov 0.0   ;;  %vm235_vm0 = vcmask 1041408   ;;  %v912_v1 = vld [vmem:[%s188_s29] sm:$0x3]  ;;  %p213_p7 = scmp.lt.s32.totalorder %s739_s12, 1 }
  0x53   : > { %224 = vst [vmem:[#allocation3] sm:$0x3] %v753_v0  ;;  %221 = vst [vmem:[#allocation2] sm:$0x3] %v753_v0  ;;  %v230_v2 = vld [vmem:[%s902_s6] sm:$0x3] }
  0x54   : > { %222 = vst [vmem:[#allocation2 + $0x2] sm:$0x3] %v753_v0  ;;  %223 = vst [vmem:[#allocation2 + $0x4] sm:$0x3] %v753_v0  ;;  %v231_v3 = vld [vmem:[%s902_s6 + $0x2] sm:$0x3] }
  0x55   : > { %225 = vst [vmem:[#allocation3 + $0x2] sm:$0x3] %v753_v0  ;;  %226 = vst [vmem:[#allocation3 + $0x4] sm:$0x3] %v753_v0  ;;  %vm272_vm1 = vcmp.eq.f32.partialorder %v912_v1, 1.0  ;;  %vm285_vm2 = vcmp.eq.f32.partialorder %v912_v1, 2.0 }
  0x56   : > { %227 = vst [vmem:[#allocation4] sm:$0x3] %v753_v0  ;;  %228 = vst [vmem:[#allocation4 + $0x2] sm:$0x3] %v753_v0  ;;  %v274_v6 = vsel %vm272_vm1, 1.0, %v753_v0  ;;  %v287_v7 = vsel %vm285_vm2, 1.0, %v753_v0 }
  0x57   : > { %229 = vst [vmem:[#allocation4 + $0x4] sm:$0x3] %v753_v0  ;;  %vm301_vm3 = vcmp.eq.f32.partialorder %v912_v1, 3.0  ;;  %v236_v9 = vsel %vm235_vm0, %v230_v2, -inf  ;;  %v232_v13 = vld [vmem:[%s902_s6 + $0x4] sm:$0x3] }
  0x58   : > { %v303_v12 = vsel %vm301_vm3, 1.0, %v753_v0  ;;  %v233_v14 = vld [vmem:[%s902_s6 + $0x6] sm:$0x3]  ;;  %v237_v15 = vsel %vm235_vm0, %v231_v3, -inf  ;;  %v238_v17 = vsel %vm235_vm0, %v232_v13, -inf  ;;  %s1003_s12 = smov (!%p213_p7, %s739_s12), 1 }
  0x59   : > { %v239_v18 = vsel %vm235_vm0, %v233_v14, -inf  ;;  %v240_v19 = vmax.f32 %v236_v9, %v237_v15  ;;  %vm422_vm4 = vcmask 1041409   ;;  %vm424_vm5 = vcmask 1042434   ;;  %s556_s20 = sshll.u32 %s1003_s12, 2 }
  0x5a   : > { %v279_v4 = vld [vmem:[#allocation3] sm:$0x3]  ;;  %v241_v20 = vmax.f32 %v238_v17, %v239_v18  ;;  %v276_v55 = vld [vmem:[#allocation2] sm:$0x3]  ;;  %vm439_vm6 = vcmask 7168   ;;  %vm441_vm7 = vcmask 15360   ;;  %s216_s8 = scalar_lea.vmem %s987_s2, %s556_s20 }
  0x5b   : > { %v280_v10 = vadd.f32 %v279_v4, %v274_v6  ;;  %v290_v57 = vld [vmem:[#allocation2 + $0x2] sm:$0x3]  ;;  %v306_v59 = vld [vmem:[#allocation2 + $0x4] sm:$0x3]  ;;  %vm443_vm8 = vcmask 18432  }
  0x5c   : > { %v294_v5 = vld [vmem:[#allocation3 + $0x2] sm:$0x3]  ;;  %v310_v8 = vld [vmem:[#allocation3 + $0x4] sm:$0x3]  ;;  %v242_v21 = vmax.f32 %v240_v19, %v241_v20 }
  0x5d   : > { %v295_v11 = vadd.f32 %v294_v5, %v287_v7  ;;  %v311_v16 = vadd.f32 %v310_v8, %v303_v12  ;;  %281 = vst [vmem:[#allocation3] sm:$0x3] %v280_v10  ;;  %v298_v60 = vld [vmem:[#allocation4 + $0x2] sm:$0x3] }
  0x5e   : > { %v243_v22 = vsub.f32 %v230_v2, %v242_v21  ;;  %v244_v23 = vsub.f32 %v231_v3, %v242_v21  ;;  %v245_v24 = vsub.f32 %v232_v13, %v242_v21  ;;  %v246_v25 = vsub.f32 %v233_v14, %v242_v21  ;;  %v282_v2 = vld [vmem:[#allocation4] sm:$0x3]  ;;  %v314_v7 = vld [vmem:[#allocation4 + $0x4] sm:$0x3] }
  0x5f   : > { %296 = vst [vmem:[#allocation3 + $0x2] sm:$0x3] %v295_v11  ;;  %312 = vst [vmem:[#allocation3 + $0x4] sm:$0x3] %v311_v16 }
  0x60   : > { %v247_v26 = vmul.f32 1.442695, %v243_v22  ;;  %v249_v27 = vmul.f32 1.442695, %v244_v23  ;;  %v251_v28 = vmul.f32 1.442695, %v245_v24 }
  0x61   : > { %v253_v31 = vmul.f32 1.442695, %v246_v25 }
  0x62   : > { %623 = vpow2.f32 %v247_v26 }
  0x63   : > { %625 = vpow2.f32 %v249_v27 }
  0x64   : > { %v353_v29 = vld [vmem:[#allocation3] sm:$0x3]  ;;  %627 = vpow2.f32 %v251_v28 }
  0x65   : > { %v356_v32 = vsel %vm235_vm0, %v353_v29, 0.0  ;;  %629 = vpow2.f32 %v253_v31 }
  0x66   : > { %v354_v30 = vld [vmem:[#allocation3 + $0x2] sm:$0x3]  ;;  %357 = vadd.xlane.f32.xlu1 %v356_v32  ;;  %v355_v34 = vld [vmem:[#allocation3 + $0x4] sm:$0x3] }
  0x67   : > { %v359_v33 = vsel %vm235_vm0, %v354_v30, 0.0  ;;  %v362_v35 = vsel %vm235_vm0, %v355_v34, 0.0 }
  0x6a   : > { %360 = vadd.xlane.f32.xlu1 %v359_v33 }
  0x6c   : > { %v624_v36 = vpop.eup %623 }
  0x6d   : > { %v626_v37 = vpop.eup %625  ;;  %v255_v38 = vsel %vm235_vm0, %v624_v36, 0.0 }
  0x6e   : > { %363 = vadd.xlane.f32.xlu1 %v362_v35  ;;  %v628_v39 = vpop.eup %627  ;;  %v256_v40 = vsel %vm235_vm0, %v626_v37, 0.0 }
  0x6f   : > { %v630_v41 = vpop.eup %629  ;;  %v257_v42 = vadd.f32 %v256_v40, %v255_v38  ;;  %v258_v43 = vsel %vm235_vm0, %v628_v39, 0.0 }
  0x70   : > { %v260_v44 = vsel %vm235_vm0, %v630_v41, 0.0 }
  0x71   : > { %v259_v45 = vadd.f32 %v258_v43, %v257_v42 }
  0x73   : > { %v261_v46 = vadd.f32 %v260_v44, %v259_v45 }
  0x75   : > { %631 = vrcp.f32 %v261_v46 }
  0x7f   : > { %v632_v47 = vpop.eup %631 }
  0x80   : > { %v263_v48 = vmul.f32 %v632_v47, %v261_v46 }
  0x82   : > { %v264_v49 = vsub.f32 2.0, %v263_v48 }
  0x84   : > { %v265_v50 = vmul.f32 %v632_v47, %v264_v49 }
  0x86   : > { %v266_v51 = vmul.f32 %v265_v50, %v261_v46 }
  0x88   : > { %v267_v52 = vsub.f32 2.0, %v266_v51 }
  0x8a   : > { %v268_v53 = vmul.f32 %v267_v52, %v265_v50 }
  0x8c   : > { %v269_v54 = vmul.f32 %v626_v37, %v268_v53  ;;  %v270_v56 = vmul.f32 %v628_v39, %v268_v53  ;;  %v271_v58 = vmul.f32 %v630_v41, %v268_v53 }
  0x8e   : > { %v273_v61 = vsel %vm272_vm1, %v269_v54, 0.0  ;;  %v286_v62 = vsel %vm285_vm2, %v270_v56, 0.0  ;;  %v302_v63 = vsel %vm301_vm3, %v271_v58, 0.0  ;;  %v288_v0 = vmul.f32 %v270_v56, %v270_v56 }
  0x8f   : > { %v277_v3 = vadd.f32 %v276_v55, %v273_v61  ;;  %v291_v4 = vadd.f32 %v290_v57, %v286_v62  ;;  %v307_v5 = vadd.f32 %v306_v59, %v302_v63  ;;  %v275_v6 = vmul.f32 %v269_v54, %v269_v54 }
  0x90   : > { %v299_v8 = vadd.f32 %v298_v60, %v288_v0  ;;  %v304_v9 = vmul.f32 %v271_v58, %v271_v58 }
  0x91   : > { %278 = vst [vmem:[#allocation2] sm:$0x3] %v277_v3  ;;  %292 = vst [vmem:[#allocation2 + $0x2] sm:$0x3] %v291_v4  ;;  %v283_v10 = vadd.f32 %v282_v2, %v275_v6 }
  0x92   : > { %308 = vst [vmem:[#allocation2 + $0x4] sm:$0x3] %v307_v5  ;;  %300 = vst [vmem:[#allocation4 + $0x2] sm:$0x3] %v299_v8  ;;  %v315_v11 = vadd.f32 %v314_v7, %v304_v9 }
  0x93   : > { %284 = vst [vmem:[#allocation4] sm:$0x3] %v283_v10 }
  0x94   : > { %316 = vst [vmem:[#allocation4 + $0x4] sm:$0x3] %v315_v11 }
  0x98   : > { %v320_v12 = vld [vmem:[#allocation2] sm:$0x3]  ;;  %v321_v1 = vld [vmem:[#allocation2 + $0x2] sm:$0x3] }
  0x99   : > { %v323_v13 = vsel %vm235_vm0, %v320_v12, 0.0  ;;  %v387_v14 = vld [vmem:[#allocation4 + $0x2] sm:$0x3]  ;;  %v326_v16 = vsel %vm235_vm0, %v321_v1, 0.0  ;;  %v322_v17 = vld [vmem:[#allocation2 + $0x4] sm:$0x3] }
  0x9a   : > { %324 = vadd.xlane.f32.xlu0 %v323_v13  ;;  %v392_v15 = vsel %vm235_vm0, %v387_v14, 0.0  ;;  %v329_v18 = vsel %vm235_vm0, %v322_v17, 0.0  ;;  %v386_v19 = vld [vmem:[#allocation4] sm:$0x3] }
  0x9b   : > { %393 = vadd.xlane.f32.xlu1 %v392_v15  ;;  %v389_v20 = vsel %vm235_vm0, %v386_v19, 0.0  ;;  %v388_v21 = vld [vmem:[#allocation4 + $0x4] sm:$0x3] }
  0x9c   : > { %v395_v22 = vsel %vm235_vm0, %v388_v21, 0.0 }
  0x9e   : > { %327 = vadd.xlane.f32.xlu0 %v326_v16 }
  0xa2   : > { %330 = vadd.xlane.f32.xlu0 %v329_v18 }
  0xa6   : > { %390 = vadd.xlane.f32.xlu0 %v389_v20 }
  0xaa   : > { %396 = vadd.xlane.f32.xlu0 %v395_v22 }
  0xf3   : > { %v358_v23 = vpop.xlane.xlu1 %357 }
  0xf4   : > { %v365_v26 = vsel %vm235_vm0, %v358_v23, 0.0 }
  0xf5   : > { %v366_v29 = vrot.slane %v365_v26, 4 }
  0xf7   : > { %v361_v24 = vpop.xlane.xlu1 %360  ;;  %v367_v37 = vadd.f32 %v366_v29, %v365_v26 }
  0xf8   : > { %v372_v27 = vsel %vm235_vm0, %v361_v24, 0.0 }
  0xf9   : > { %v373_v32 = vrot.slane %v372_v27, 4  ;;  %v368_v46 = vrot.slane %v367_v37, 2 }
  0xfb   : > { %v364_v25 = vpop.xlane.xlu1 %363  ;;  %v374_v40 = vadd.f32 %v373_v32, %v372_v27  ;;  %v369_v56 = vadd.f32 %v368_v46, %v367_v37 }
  0xfc   : > { %v379_v33 = vsel %vm235_vm0, %v364_v25, 0.0 }
  0xfd   : > { %v380_v38 = vrot.slane %v379_v33, 4  ;;  %v375_v49 = vrot.slane %v374_v40, 2  ;;  %v370_v5 = vrot.slane %v369_v56, 1 }
  0xff   : > { %v381_v47 = vadd.f32 %v380_v38, %v379_v33  ;;  %v376_v59 = vadd.f32 %v375_v49, %v374_v40  ;;  %v371_v16 = vadd.f32 %v370_v5, %v369_v56 }
 0x101   : > { %v382_v57 = vrot.slane %v381_v47, 2  ;;  %v377_v8 = vrot.slane %v376_v59, 1 }
 0x103   : > { %v383_v6 = vadd.f32 %v382_v57, %v381_v47  ;;  %v378_v18 = vadd.f32 %v377_v8, %v376_v59 }
 0x105   : > { %v384_v17 = vrot.slane %v383_v6, 1 }
 0x107   : > { %v385_v26 = vadd.f32 %v384_v17, %v383_v6 }
 0x127   : > { %v325_v28 = vpop.xlane.xlu0 %324 }
 0x128   : > { %v332_v30 = vsel %vm235_vm0, %v325_v28, 0.0  ;;  %v394_v31 = vpop.xlane.xlu1 %393  ;;  %v430_v28 = vsel %vm422_vm4, %v378_v18, %v371_v16 }
 0x129   : > { %v333_v34 = vrot.slane %v332_v30, 4  ;;  %v405_v36 = vsel %vm235_vm0, %v394_v31, 0.0 }
 0x12a   : > { %v406_v42 = vrot.slane %v405_v36, 4 }
 0x12b   : > { %v328_v35 = vpop.xlane.xlu0 %327  ;;  %v334_v43 = vadd.f32 %v333_v34, %v332_v30  ;;  %v431_v34 = vsel %vm424_vm5, %v385_v26, %v430_v28 }
 0x12c   : > { %v339_v39 = vsel %vm235_vm0, %v328_v35, 0.0  ;;  %v407_v52 = vadd.f32 %v406_v42, %v405_v36 }
 0x12d   : > { %v340_v41 = vrot.slane %v339_v39, 4  ;;  %v335_v53 = vrot.slane %v334_v43, 2 }
 0x12e   : > { %v408_v63 = vrot.slane %v407_v52, 2 }
 0x12f   : > { %v341_v44 = vadd.f32 %v340_v41, %v339_v39  ;;  %v331_v45 = vpop.xlane.xlu0 %330  ;;  %v336_v0 = vadd.f32 %v335_v53, %v334_v43 }
 0x130   : > { %v346_v48 = vsel %vm235_vm0, %v331_v45, 0.0  ;;  %v409_v1 = vadd.f32 %v408_v63, %v407_v52 }
 0x131   : > { %v342_v50 = vrot.slane %v341_v44, 2  ;;  %v347_v51 = vrot.slane %v346_v48, 4  ;;  %v337_v13 = vrot.slane %v336_v0, 1 }
 0x132   : > { %v410_v23 = vrot.slane %v409_v1, 1 }
 0x133   : > { %v348_v54 = vadd.f32 %v347_v51, %v346_v48  ;;  %v391_v55 = vpop.xlane.xlu0 %390  ;;  %v343_v60 = vadd.f32 %v342_v50, %v341_v44  ;;  %v338_v24 = vadd.f32 %v337_v13, %v336_v0 }
 0x134   : > { %v398_v58 = vsel %vm235_vm0, %v391_v55, 0.0  ;;  %v411_v32 = vadd.f32 %v410_v23, %v409_v1 }
 0x135   : > { %v349_v61 = vrot.slane %v348_v54, 2  ;;  %v399_v62 = vrot.slane %v398_v58, 4  ;;  %v344_v9 = vrot.slane %v343_v60, 1 }
 0x137   : > { %v350_v2 = vadd.f32 %v349_v61, %v348_v54  ;;  %v400_v3 = vadd.f32 %v399_v62, %v398_v58  ;;  %v397_v4 = vpop.xlane.xlu0 %396  ;;  %v345_v19 = vadd.f32 %v344_v9, %v343_v60 }
 0x138   : > { %v412_v7 = vsel %vm235_vm0, %v397_v4, 0.0 }
 0x139   : > { %v401_v10 = vrot.slane %v400_v3, 2  ;;  %v413_v11 = vrot.slane %v412_v7, 4  ;;  %v351_v12 = vrot.slane %v350_v2, 1  ;;  %v423_v29 = vsel %vm422_vm4, %v345_v19, %v338_v24 }
 0x13b   : > { %v402_v14 = vadd.f32 %v401_v10, %v400_v3  ;;  %v414_v15 = vadd.f32 %v413_v11, %v412_v7  ;;  %v352_v22 = vadd.f32 %v351_v12, %v350_v2 }
 0x13d   : > { %v403_v20 = vrot.slane %v402_v14, 1  ;;  %v415_v21 = vrot.slane %v414_v15, 2  ;;  %v425_v31 = vsel %vm424_vm5, %v352_v22, %v423_v29 }
 0x13e   : > { %v440_v36 = vsel %vm439_vm6, %v425_v31, %v431_v34 }
 0x13f   : > { %v416_v25 = vadd.f32 %v415_v21, %v414_v15  ;;  %v404_v27 = vadd.f32 %v403_v20, %v402_v14 }
 0x141   : > { %v417_v30 = vrot.slane %v416_v25, 1  ;;  %v436_v35 = vsel %vm422_vm4, %v411_v32, %v404_v27 }
 0x143   : > { %v418_v33 = vadd.f32 %v417_v30, %v416_v25 }
 0x145   : > { %v437_v37 = vsel %vm424_vm5, %v418_v33, %v436_v35 }
 0x146   : > { %v442_v38 = vsel %vm441_vm7, %v440_v36, %v437_v37 }
 0x147   : > { %444 = vst.msk [vmem:[%s216_s8] sm:$0x7] %vm443_vm8, %v442_v38 }
 0x148 PF: > { %s18_s14 = sadd.s32 1, %s747_s14   ;;  %s995_s9 = smov %s731_s10 }
 0x149   : > { %p15_p9 = scmp.ge.s32.totalorder %s18_s14, 4   ;;  %s996_s10 = smov %s735_s11 }
 0x14a   : > { %s997_s11 = smov %s818_s21  ;;  %s998_s12 = smov %s743_s13 }
 0x14b   : > { %s999_s13 = smov %s1001_s16  ;;  %17 = sbr.rel (!%p15_p9) target bundleno = 6 (0x6), region = 95 }
 0x152   :  { %464 = vsyncpa [#allocation6], 1 }
 0x153   :  { %466 = vsyncpa [#allocation6 + $0x1], 1 }
 0x154   :  { %467 = vsyncpa [#allocation8], 1 }
 0x155   :  { %469 = vsyncpa [#allocation8 + $0x1], 1 }

</bundles_post_ra>
